<compile_context>
chip_gen: v6e
topology: v6e:2x2x1
jax: 0.10.0
libtpu: 0.0.40
codegen_flags: <defaults>
</compile_context>

<pallas_src>
import functools

import jax
import jax.numpy as jnp
from jax.experimental import pallas as pl
from jax.experimental.pallas import tpu as pltpu

_MIB = 1024 * 1024


def _round_up(x, m):
    return (x + m - 1) // m * m


def _vmem_capacity_bytes():
    """Physical per-core VMEM; conservative fallback = 64 MiB (v7x per-TC)."""
    try:
        cap = getattr(pltpu.get_tpu_info(), "vmem_capacity_bytes", None)
        if cap:
            return int(cap)
    except Exception:
        pass
    return 64 * _MIB


# ----------------------------- kernels -------------------------------------


def _ffn_kernel_resident(x_ref, g_ref, w1_ref, w2_ref, w3_ref, o_ref, *,
                         eps, inv_d):
    """All weights VMEM-resident; grid = (M tiles,)."""
    xf = x_ref[...].astype(jnp.float32)
    # RMSLayerNorm in f32; the mean is over the *original* D (inv_d); padded
    # columns of x/gamma are zero so the sum is unaffected.
    var = jnp.sum(xf * xf, axis=-1, keepdims=True) * inv_d
    h = (xf * jax.lax.rsqrt(var + eps)
         * g_ref[...]).astype(w1_ref.dtype)
    h1 = jnp.dot(h, w1_ref[...], preferred_element_type=jnp.float32)
    h2 = jnp.dot(h, w2_ref[...], preferred_element_type=jnp.float32)
    hidden = (h1 * jax.nn.sigmoid(h1) * h2).astype(w3_ref.dtype)    # SwiGLU
    down = jnp.dot(hidden, w3_ref[...], preferred_element_type=jnp.float32)
    o_ref[...] = (xf + down).astype(o_ref.dtype)


def _ffn_kernel_tiled(x_ref, g_ref, w1_ref, w2_ref, w3_ref, o_ref,
                      acc_ref, h_ref, *, eps, inv_d):
    """Weights streamed per H tile; grid = (M tiles, H tiles)."""
    j = pl.program_id(1)

    @pl.when(j == 0)
    def _():
        xf = x_ref[...].astype(jnp.float32)
        var = jnp.sum(xf * xf, axis=-1, keepdims=True) * inv_d
        h = xf * jax.lax.rsqrt(var + eps) * g_ref[...]
        h_ref[...] = h.astype(h_ref.dtype)
        acc_ref[...] = jnp.zeros_like(acc_ref)

    h = h_ref[...]
    h1 = jnp.dot(h, w1_ref[...], preferred_element_type=jnp.float32)
    h2 = jnp.dot(h, w2_ref[...], preferred_element_type=jnp.float32)
    hidden = (h1 * jax.nn.sigmoid(h1) * h2).astype(w3_ref.dtype)
    acc_ref[...] += jnp.dot(hidden, w3_ref[...],
                            preferred_element_type=jnp.float32)

    @pl.when(j == pl.num_programs(1) - 1)
    def _():
        o_ref[...] = (x_ref[...].astype(jnp.float32)
                      + acc_ref[...]).astype(o_ref.dtype)


# ------------------------ weight preparation (one-time) ---------------------


def prepare_feed_forward_weights(gamma, w1, w2, w3, *, dtype=None):
    """One-time packing of PyTorch-layout weights into kernel layout.

    gamma: [D]   w1, w2: [H, D]   w3: [D, H]   (nn.Linear layouts, no bias)
    Call this once at weight-load time, NOT per forward call — it otherwise
    adds full-weight HBM read/write traffic to every call.
    Passing dtype=jnp.bfloat16 for f32 models runs both matmuls on the
    bf16-native MXU (f32 accumulation is kept).
    """
    H, D = w1.shape
    dtype = jnp.dtype(dtype if dtype is not None else w1.dtype)
    D_pad = _round_up(D, 128)
    H_pad = _round_up(H, 128)
    pad_d, pad_h = D_pad - D, H_pad - H
    return dict(
        D=D, H=H, D_pad=D_pad, H_pad=H_pad, dtype=dtype,
        # gamma stays f32 (RMSNorm runs in f32 on the VPU).
        gamma=jnp.pad(gamma.reshape(1, D).astype(jnp.float32),
                      ((0, 0), (0, pad_d))),
        w1t=jnp.pad(w1.T, ((0, pad_d), (0, pad_h))).astype(dtype),
        w2t=jnp.pad(w2.T, ((0, pad_d), (0, pad_h))).astype(dtype),
        w3t=jnp.pad(w3.T, ((0, pad_h), (0, pad_d))).astype(dtype),
    )


# --------------------------- tile-size selection ----------------------------


def _pick_th(h_pad, target):
    """Largest multiple of 128 that divides h_pad and is <= target."""
    n = h_pad // 128
    best = 128
    for k in range(1, n + 1):
        if n % k == 0 and 128 * k <= max(target, 128):
            best = 128 * k
    return best


def _resident_footprint(tm, d_pad, h_pad, isz):
    weights = 2 * 3 * d_pad * h_pad * isz          # conservative x2 buffering
    io = 2 * 2 * tm * d_pad * isz                  # x + out tiles, dbl-buffered
    inter = tm * (8 * d_pad + isz * d_pad          # xf, down (f32), h (dtype)
                  + h_pad * (12 + isz))            # h1, h2, hidden
    return weights + io + inter


def _tiled_footprint(tm, th, d_pad, isz):
    weights = 2 * 3 * d_pad * th * isz             # w1/w2/w3 tiles, dbl-buffered
    io = 2 * 2 * tm * d_pad * isz                  # x + out tiles
    scratch = tm * d_pad * (4 + isz)               # f32 accumulator + h scratch
    inter = tm * (8 * d_pad + th * (12 + isz))     # xf, partial down, h1,h2,hidden
    return weights + io + scratch + inter


def _choose_config(M, d_pad, h_pad, isz, budget, tm, th, weights_resident):
    tm_cap = _round_up(M, 8)
    if tm is not None:
        tm_list = [max(8, min(_round_up(tm, 8), tm_cap))]
    else:
        tm_list = [t for t in (1024, 768, 512, 384, 256, 128, 64, 32, 16, 8)
                   if t <= tm_cap] or [tm_cap]

    # Weights-resident fast path: no weight re-streaming, no accumulator RMW.
    if weights_resident is not False:
        for t in tm_list:
            if _resident_footprint(t, d_pad, h_pad, isz) <= budget:
                return True, t, h_pad
        if weights_resident:                       # explicitly requested
            return True, tm_list[-1], h_pad

    # H-tiled path: maximize tm first (intensity over streamed weights ~ tm
    # FLOP/byte; break-even ~660 v6e / ~310 v7x / ~240 v5e), then grow th.
    th_target = 1024 if th is None else th
    for t in tm_list:
        cand = _pick_th(h_pad, th_target)
        while cand > 128 and _tiled_footprint(t, cand, d_pad, isz) > budget:
            cand = _pick_th(h_pad, cand - 128)
        if _tiled_footprint(t, cand, d_pad, isz) <= budget:
            return False, t, cand
    return False, tm_list[-1], 128


# ------------------------------- wrapper ------------------------------------


def feed_forward_block(x, gamma=None, w1=None, w2=None, w3=None, *,
                       prepared=None, eps=1e-6, tm=None, th=None,
                       weights_resident=None):
    """x: [B,S,D].  Either pass (gamma, w1, w2, w3) in PyTorch layout, or pass
    `prepared` from prepare_feed_forward_weights (preferred: hoists the weight
    transpose/pad/cast out of the per-call path)."""
    if prepared is None:
        prepared = prepare_feed_forward_weights(gamma, w1, w2, w3,
                                                dtype=x.dtype)

    B, S, D = x.shape
    assert D == prepared["D"], "x feature dim does not match prepared weights"
    H_pad, D_pad = prepared["H_pad"], prepared["D_pad"]
    wdtype = prepared["dtype"]
    out_dtype = x.dtype
    isz = jnp.dtype(wdtype).itemsize
    M = B * S

    vmem_cap = _vmem_capacity_bytes()
    budget = max(32 * _MIB, vmem_cap - 12 * _MIB)   # leave compiler headroom

    resident, tm, th = _choose_config(M, D_pad, H_pad, isz, budget, tm, th,
                                      weights_resident)

    # Prefer >=2 token tiles when it is free (resident weights) so the
    # "parallel" axis can shard across both TensorCores on v7x.
    if (resident and _round_up(M, tm) // tm < 2
            and tm >= 16 and (tm // 2) % 8 == 0):
        tm //= 2

    M_pad = _round_up(M, tm)
    nM = M_pad // tm
    inv_d = 1.0 / D

    # Activations: skip the pad/slice HBM copies in the aligned (common) case.
    x2 = x.reshape(M, D)
    if M_pad != M or D_pad != D:
        x2 = jnp.pad(x2, ((0, M_pad - M), (0, D_pad - D)))

    if resident:
        footprint = _resident_footprint(tm, D_pad, H_pad, isz)
        grid = (nM,)
        kernel = functools.partial(_ffn_kernel_resident, eps=eps, inv_d=inv_d)
        in_specs = [
            pl.BlockSpec((tm, D_pad), lambda i: (i, 0)),      # x tile
            pl.BlockSpec((1, D_pad), lambda i: (0, 0)),       # gamma
            pl.BlockSpec((D_pad, H_pad), lambda i: (0, 0)),   # W1^T (resident)
            pl.BlockSpec((D_pad, H_pad), lambda i: (0, 0)),   # W2^T (resident)
            pl.BlockSpec((H_pad, D_pad), lambda i: (0, 0)),   # W3^T (resident)
        ]
        out_specs = pl.BlockSpec((tm, D_pad), lambda i: (i, 0))
        scratch_shapes = ()
        dim_sem = ("parallel",)
        weight_reads = 1
    else:
        nH = H_pad // th
        footprint = _tiled_footprint(tm, th, D_pad, isz)
        grid = (nM, nH)
        kernel = functools.partial(_ffn_kernel_tiled, eps=eps, inv_d=inv_d)
        in_specs = [
            pl.BlockSpec((tm, D_pad), lambda i, j: (i, 0)),   # x tile (resident over j)
            pl.BlockSpec((1, D_pad), lambda i, j: (0, 0)),    # gamma
            pl.BlockSpec((D_pad, th), lambda i, j: (0, j)),   # W1^T tile
            pl.BlockSpec((D_pad, th), lambda i, j: (0, j)),   # W2^T tile
            pl.BlockSpec((th, D_pad), lambda i, j: (j, 0)),   # W3^T tile
        ]
        out_specs = pl.BlockSpec((tm, D_pad), lambda i, j: (i, 0))
        scratch_shapes = (
            pltpu.VMEM((tm, D_pad), jnp.float32),   # down-proj accumulator
            pltpu.VMEM((tm, D_pad), wdtype),        # normalized activations
        )
        dim_sem = ("parallel", "arbitrary")
        weight_reads = nM                            # weights re-streamed per M tile

    vmem_limit = int(min(budget, max(32 * _MIB, footprint + 8 * _MIB)))

    cost = pl.CostEstimate(
        flops=6 * M_pad * D_pad * H_pad,
        transcendentals=M_pad * H_pad + M_pad,
        bytes_accessed=(2 * M_pad * D_pad
                        + 3 * D_pad * H_pad * weight_reads) * isz,
    )

    out = pl.pallas_call(
        kernel,
        out_shape=jax.ShapeDtypeStruct((M_pad, D_pad), out_dtype),
        grid_spec=pltpu.PrefetchScalarGridSpec(
            num_scalar_prefetch=0,
            grid=grid,
            in_specs=in_specs,
            out_specs=out_specs,
            scratch_shapes=scratch_shapes,
        ),
        compiler_params=pltpu.CompilerParams(
            dimension_semantics=dim_sem,
            vmem_limit_bytes=vmem_limit,
        ),
        cost_estimate=cost,
    )(x2, prepared["gamma"], prepared["w1t"], prepared["w2t"],
      prepared["w3t"])

    if M_pad != M or D_pad != D:
        out = out[:M, :D]
    return out.reshape(B, S, D)


# ------------------------------- reference ----------------------------------


def _reference(x, gamma, w1, w2, w3, eps=1e-6):
    xf = x.astype(jnp.float32)
    var = jnp.mean(xf * xf, axis=-1, keepdims=True)
    h = xf * jax.lax.rsqrt(var + eps) * gamma
    h1 = h @ w1.T.astype(jnp.float32)
    h2 = h @ w2.T.astype(jnp.float32)
    hidden = h1 * jax.nn.sigmoid(h1) * h2
    return (xf + hidden @ w3.T.astype(jnp.float32)).astype(x.dtype)


if __name__ == "__main__":
    def run_case(seed, B, S, D, H, **kwargs):
        kx, k1, k2, k3 = jax.random.split(jax.random.PRNGKey(seed), 4)
        x = jax.random.normal(kx, (B, S, D), dtype=jnp.float32)
        gamma = jnp.ones((D,), dtype=jnp.float32)                      # RMSNorm init
        w1 = jax.random.normal(k1, (H, D), dtype=jnp.float32) * 0.02   # nn.Linear(D,H)
        w2 = jax.random.normal(k2, (H, D), dtype=jnp.float32) * 0.02   # nn.Linear(D,H)
        w3 = jax.random.normal(k3, (D, H), dtype=jnp.float32) * 0.02   # nn.Linear(H,D)

        # One-time weight preparation (hoisted out of the per-call path).
        prepared = prepare_feed_forward_weights(gamma, w1, w2, w3, dtype=x.dtype)
        out = jax.block_until_ready(
            feed_forward_block(x, prepared=prepared, **kwargs))

        ref = _reference(x, gamma, w1, w2, w3)
        assert out.shape == (B, S, D)
        err = float(jnp.max(jnp.abs(out.astype(jnp.float32)
                                    - ref.astype(jnp.float32))))
        assert jnp.allclose(out, ref, atol=2e-4, rtol=2e-4), err

    # Small config consistent with the module (d_model=32, mlp_ratio=4 -> H=128).
    # Exercises the ragged-pad path + the weights-resident fast path.
    run_case(0, B=2, S=8, D=32, H=128)

    # Lane-aligned shapes (no activation pad) + forced H-tiled streaming path,
    # so the accumulate/finalize kernel is validated as well.
    run_case(0, B=2, S=64, D=128, H=512, weights_resident=False, th=128)

    print("KERNEL_OK")
</pallas_src>

<mosaic_0001>
module attributes {stable_mosaic.version = 11 : i64} {
  func.func @_ffn_kernel_resident(%arg0: i32, %arg1: memref<8x128xf32, #tpu.memory_space<vmem>>, %arg2: memref<1x128xf32, #tpu.memory_space<vmem>>, %arg3: memref<128x128xf32, #tpu.memory_space<vmem>>, %arg4: memref<128x128xf32, #tpu.memory_space<vmem>>, %arg5: memref<128x128xf32, #tpu.memory_space<vmem>>, %arg6: memref<8x128xf32, #tpu.memory_space<vmem>>) attributes {dimension_semantics = [#tpu.dimension_semantics<parallel>], iteration_bounds = array<i64: 2>, scalar_prefetch = 0 : i64, scratch_operands = 0 : i64, tpu.core_type = #tpu.core_type<tc>, window_params = [{transform_indices = @transform_0, window_bounds = array<i64: 8, 128>}, {pipeline_mode = #tpu.pipeline_mode<synchronous>, transform_indices = @transform_1, window_bounds = array<i64: 1, 128>}, {pipeline_mode = #tpu.pipeline_mode<synchronous>, transform_indices = @transform_2, window_bounds = array<i64: 128, 128>}, {pipeline_mode = #tpu.pipeline_mode<synchronous>, transform_indices = @transform_3, window_bounds = array<i64: 128, 128>}, {pipeline_mode = #tpu.pipeline_mode<synchronous>, transform_indices = @transform_4, window_bounds = array<i64: 128, 128>}, {transform_indices = @transform_5, window_bounds = array<i64: 8, 128>}]} {
    %c0 = arith.constant 0 : index
    %c0_0 = arith.constant 0 : index
    %0 = vector.load %arg1[%c0, %c0_0] : memref<8x128xf32, #tpu.memory_space<vmem>>, vector<8x128xf32>
    %1 = arith.mulf %0, %0 : vector<8x128xf32>
    %cst = arith.constant dense<0.000000e+00> : vector<8xf32>
    %2 = vector.multi_reduction <add>, %1, %cst [1] : vector<8x128xf32> to vector<8xf32>
    %3 = vector.shape_cast %2 : vector<8xf32> to vector<8x1xf32>
    %cst_1 = arith.constant 3.125000e-02 : f32
    %4 = vector.broadcast %cst_1 : f32 to vector<8x1xf32>
    %5 = arith.mulf %3, %4 : vector<8x1xf32>
    %cst_2 = arith.constant 9.99999997E-7 : f32
    %6 = vector.broadcast %cst_2 : f32 to vector<8x1xf32>
    %7 = arith.addf %5, %6 : vector<8x1xf32>
    %8 = math.rsqrt %7 : vector<8x1xf32>
    %9 = vector.broadcast %8 : vector<8x1xf32> to vector<8x128xf32>
    %10 = arith.mulf %0, %9 : vector<8x128xf32>
    %c0_3 = arith.constant 0 : index
    %c0_4 = arith.constant 0 : index
    %11 = vector.load %arg2[%c0_3, %c0_4] : memref<1x128xf32, #tpu.memory_space<vmem>>, vector<1x128xf32>
    %12 = vector.broadcast %11 : vector<1x128xf32> to vector<8x128xf32>
    %13 = arith.mulf %10, %12 : vector<8x128xf32>
    %c0_5 = arith.constant 0 : index
    %c0_6 = arith.constant 0 : index
    %14 = vector.load %arg3[%c0_5, %c0_6] : memref<128x128xf32, #tpu.memory_space<vmem>>, vector<128x128xf32>
    %cst_7 = arith.constant dense<0.000000e+00> : vector<8x128xf32>
    %15 = tpu.matmul %13, %14, %cst_7 {dimension_numbers = #tpu.dot_dimension_numbers<[1], [0], [0], [1], [0, 0, 1, 1], [], []>} : vector<8x128xf32>, vector<128x128xf32>, vector<8x128xf32> -> vector<8x128xf32>
    %c0_8 = arith.constant 0 : index
    %c0_9 = arith.constant 0 : index
    %16 = vector.load %arg4[%c0_8, %c0_9] : memref<128x128xf32, #tpu.memory_space<vmem>>, vector<128x128xf32>
    %cst_10 = arith.constant dense<0.000000e+00> : vector<8x128xf32>
    %17 = tpu.matmul %13, %16, %cst_10 {dimension_numbers = #tpu.dot_dimension_numbers<[1], [0], [0], [1], [0, 0, 1, 1], [], []>} : vector<8x128xf32>, vector<128x128xf32>, vector<8x128xf32> -> vector<8x128xf32>
    %18 = arith.negf %15 : vector<8x128xf32>
    %19 = math.exp %18 : vector<8x128xf32>
    %cst_11 = arith.constant 1.000000e+00 : f32
    %20 = vector.broadcast %cst_11 : f32 to vector<8x128xf32>
    %21 = arith.addf %20, %19 : vector<8x128xf32>
    %22 = arith.divf %20, %21 : vector<8x128xf32>
    %23 = arith.mulf %15, %22 : vector<8x128xf32>
    %24 = arith.mulf %23, %17 : vector<8x128xf32>
    %c0_12 = arith.constant 0 : index
    %c0_13 = arith.constant 0 : index
    %25 = vector.load %arg5[%c0_12, %c0_13] : memref<128x128xf32, #tpu.memory_space<vmem>>, vector<128x128xf32>
    %cst_14 = arith.constant dense<0.000000e+00> : vector<8x128xf32>
    %26 = tpu.matmul %24, %25, %cst_14 {dimension_numbers = #tpu.dot_dimension_numbers<[1], [0], [0], [1], [0, 0, 1, 1], [], []>} : vector<8x128xf32>, vector<128x128xf32>, vector<8x128xf32> -> vector<8x128xf32>
    %27 = arith.addf %0, %26 : vector<8x128xf32>
    %c0_15 = arith.constant 0 : index
    %c0_16 = arith.constant 0 : index
    %28 = vector.load %arg6[%c0_15, %c0_16] : memref<8x128xf32, #tpu.memory_space<vmem>>, vector<8x128xf32>
    tpu.vector_store %arg6[%c0_15, %c0_16], %27 {strides = array<i32>} : memref<8x128xf32, #tpu.memory_space<vmem>>, vector<8x128xf32>,
    return
  }
  func.func @transform_0(%arg0: i32) -> (i32, i32) {
    %c0_i32 = arith.constant 0 : i32
    %c0_i32_0 = arith.constant 0 : i32
    return %arg0, %c0_i32 : i32, i32
  }
  func.func @transform_1(%arg0: i32) -> (i32, i32) {
    %c0_i32 = arith.constant 0 : i32
    %c0_i32_0 = arith.constant 0 : i32
    %c0_i32_1 = arith.constant 0 : i32
    return %c0_i32, %c0_i32_0 : i32, i32
  }
  func.func @transform_2(%arg0: i32) -> (i32, i32) {
    %c0_i32 = arith.constant 0 : i32
    %c0_i32_0 = arith.constant 0 : i32
    %c0_i32_1 = arith.constant 0 : i32
    return %c0_i32, %c0_i32_0 : i32, i32
  }
  func.func @transform_3(%arg0: i32) -> (i32, i32) {
    %c0_i32 = arith.constant 0 : i32
    %c0_i32_0 = arith.constant 0 : i32
    %c0_i32_1 = arith.constant 0 : i32
    return %c0_i32, %c0_i32_0 : i32, i32
  }
  func.func @transform_4(%arg0: i32) -> (i32, i32) {
    %c0_i32 = arith.constant 0 : i32
    %c0_i32_0 = arith.constant 0 : i32
    %c0_i32_1 = arith.constant 0 : i32
    return %c0_i32, %c0_i32_0 : i32, i32
  }
  func.func @transform_5(%arg0: i32) -> (i32, i32) {
    %c0_i32 = arith.constant 0 : i32
    %c0_i32_0 = arith.constant 0 : i32
    return %arg0, %c0_i32 : i32, i32
  }
}

</mosaic_0001>

<bundles_post_ra>
// kernel: tpu_custom_call.1
= control target key start
LH: loop header
LB: loop body
LE: loop exit
PB: predicated region body
PF: predicated region fallthrough
CT: control target
= control target key end

     0   :  { %10 = vsyncpa [#allocation3], 0  ;;  %s1410_s0 = inlined_call_operand.hbm [shape: f32[16,128], index: 0, kind: input, shape index: {}]   ;;  %s1411_s1 = inlined_call_operand.vmem [shape: f32[1,128], index: 1, kind: input, shape index: {}]   ;;  %s1412_s2 = inlined_call_operand.hbm [shape: f32[128,128], index: 2, kind: input, shape index: {}]   ;;  %s1413_s3 = inlined_call_operand.hbm [shape: f32[128,128], index: 3, kind: input, shape index: {}]   ;;  %s1414_s4 = inlined_call_operand.hbm [shape: f32[128,128], index: 4, kind: input, shape index: {}]   ;;  %s1415_s5 = inlined_call_operand.hbm [shape: f32[16,128], index: 5, kind: output, shape index: {}]  }
   0x1   :  { %12 = vsyncpa [#allocation3 + $0x1], 0 }
   0x2   :  { %13 = vsyncpa [#allocation6], 0 }
   0x3   :  { %14 = vsyncpa [#allocation9], 0 }
   0x4   :  { %15 = vsyncpa [#allocation4], 0 }
   0x5   :  { %17 = vsyncpa [#allocation4 + $0x1], 0  ;;  %s1163_s18 = smov 0   ;;  %s1165_s19 = smov 0  }
   0x6   :  { %s1167_s20 = smov 0   ;;  %s1169_s21 = smov 0  }
   0x7 LB: > { %s1184_s22 = sadd.s32 4294967295, %s1122_s21   ;;  %s681_s23 = sadd.s32 4294967294, %s1122_s21   ;;  %s1122_s21 = sphi %s1169_s21, %s1439_s21   ;;  %s1118_s20 = sphi %s1167_s20, %s1438_s20   ;;  %s1114_s19 = sphi %s1165_s19, %s1437_s19   ;;  %s1110_s18 = sphi %s1163_s18, %s1436_s18  }
   0x8   : > { %p43_p0 = scmp.ne.s32.totalorder %s1114_s19, %s1110_s18  ;;  %p1416_p1 = scmp.eq.s32.totalorder %s1184_s22, 0 }
   0x9   : > { %p157_p3 = scmp.eq.s32.totalorder %s681_s23, 1  ;;  %p682_p5 = scmp.ge.s32.totalorder %s1122_s21, 1 }
   0xa   : > { %p1193_p4 = por %p1416_p1, %p43_p0  ;;  %p164_p7 = scmp.lt.s32.totalorder %s1122_s21, 3 }
   0xb   : > { %p1198_p6 = por %p157_p3, %p43_p0  ;;  %s1124_s27 = smov [#allocation5]  }
   0xc   : > { %s1420_s24 = scalar_select %p1193_p4, 1, 0 }
   0xd   : > { %s1421_s25 = scalar_select %p1198_p6, 1, 0 }
   0xe   : > { %p1203_p8 = pnand %p682_p5, %p164_p7  ;;  %s179_s28 = sshll.u32 %s1124_s27, 4  ;;  %s180_s28 = int_to_ptr.vmem [resolvable:$true] %s179_s28 }
   0xf   : > { %s1125_s30 = smov [#allocation7]   ;;  %s1126_s7 = smov [#allocation8]  }
  0x10   : > { %s1422_s26 = scalar_select %p1203_p8, 1, 0 }
  0x11   : > { %p873_p9 = pneg %p1203_p8  ;;  %s192_s6 = sshll.u32 %s1125_s30, 4  ;;  %s193_s6 = int_to_ptr.vmem [resolvable:$true] %s192_s6 }
  0x12   : > { %s205_s8 = sshll.u32 %s1126_s7, 4  ;;  %s955_s9 = scalar_lea.vmem %s180_s28, 2048  ;;  %s206_s8 = int_to_ptr.vmem [resolvable:$true] %s205_s8 }
  0x13   : > { %p1212_p11 = pnand %p873_p9, %p1416_p1  ;;  %p956_p13 = scmp.ne.s32.totalorder %s180_s28, %s955_s9 }
  0x14   : > { %p963_p5 = scmp.lt.s32.totalorder %s180_s28, %s180_s28  ;;  %p964_p7 = scmp.lt.s32.totalorder %s955_s9, %s955_s9 }
  0x15   : > { %p946_p12 = pneg %p1212_p11 }
  0x16   : > { %p965_p9 = por %p964_p7, %p963_p5 }
  0x17   : > { %p958_p0 = pnand %p956_p13, %p946_p12 }
  0x19   : > { %p959_p3 = pneg %p958_p0 }
  0x1b   : > { %p966_p10 = pnand %p965_p9, %p959_p3 }
  0x1d   : > { %969 = shalt.err (!%p966_p10)
}
  0x1e   : > { %s1127_s10 = smov 128   ;;  %s1128_s11 = smov 8  }
  0x1f   : > { %876 = dma.hbm_to_vmem [thread:$0]  (!%p1212_p11), %s1412_s2, 2048, %s180_s28, [#allocation6], %s1127_s10, %s1127_s10, %s1128_s11  }
  0x20   : > { %s981_s14 = scalar_lea.vmem %s193_s6, 2048  ;;  %p989_p2 = scmp.lt.s32.totalorder %s193_s6, %s193_s6 }
  0x21   : > { %p982_p1 = scmp.ne.s32.totalorder %s193_s6, %s981_s14  ;;  %p990_p6 = scmp.lt.s32.totalorder %s981_s14, %s981_s14 }
  0x23   : > { %p984_p13 = pnand %p982_p1, %p946_p12  ;;  %p991_p5 = por %p990_p6, %p989_p2 }
  0x25   : > { %p985_p0 = pneg %p984_p13 }
  0x27   : > { %p992_p3 = pnand %p991_p5, %p985_p0 }
  0x29   : > { %995 = shalt.err (!%p992_p3)
}
  0x2a   : > { %879 = dma.hbm_to_vmem [thread:$0]  (!%p1212_p11), %s1413_s3, 2048, %s193_s6, [#allocation6], %s1127_s10, %s1127_s10, %s1128_s11  }
  0x2b   : > { %s1007_s17 = scalar_lea.vmem %s206_s8, 2048  ;;  %p1015_p9 = scmp.lt.s32.totalorder %s206_s8, %s206_s8 }
  0x2c   : > { %p1008_p10 = scmp.ne.s32.totalorder %s206_s8, %s1007_s17  ;;  %p1016_p13 = scmp.lt.s32.totalorder %s1007_s17, %s1007_s17 }
  0x2e   : > { %p1010_p7 = pnand %p1008_p10, %p946_p12  ;;  %p1017_p4 = por %p1016_p13, %p1015_p9 }
  0x30   : > { %p1011_p1 = pneg %p1010_p7 }
  0x32   : > { %p1018_p2 = pnand %p1017_p4, %p1011_p1 }
  0x34   : > { %1021 = shalt.err (!%p1018_p2)
}
  0x35   : > { %882 = dma.hbm_to_vmem [thread:$0]  (!%p1212_p11), %s1414_s4, 2048, %s206_s8, [#allocation9], %s1127_s10, %s1127_s10, %s1128_s11  }
  0x36   : > { %s1243_s28 = sadd.s32 1, %s1122_s21   ;;  %s30_s29 = sadd.s32 1, %s1118_s20 }
  0x37   : > { %s27_s30 = ssub.s32 %s1122_s21, %s1243_s28  ;;  %p37_p6 = scmp.ne.s32.totalorder %s1118_s20, %s1114_s19 }
  0x38   : > { %p28_p4 = scmp.eq.s32.totalorder %s27_s30, 0  ;;  %p38_p12 = scmp.eq.s32.totalorder %s1122_s21, 0 }
  0x39   : > { %p894_p0 = scmp.lt.s32.totalorder %s1122_s21, 2  ;;  %p1424_p3 = scmp.eq.s32.totalorder %s1184_s22, 1 }
  0x3a   : > { %s1253_s6 = scalar_select %p28_p4, %s1118_s20, %s30_s29  }
  0x3b   : > { %p39_p5 = por %p38_p12, %p37_p6  ;;  %p1257_p10 = por %p1424_p3, %p37_p6 }
  0x3c   : > { %s219_s9 = sand.u32 1, %s1118_s20   ;;  %s688_s12 = sshll.u32 %s1122_s21, 7 }
  0x3d   : > { %s1425_s7 = scalar_select %p1257_p10, 1, 0 }
  0x3e   : > { %s687_s8 = sshll.u32 %s219_s9, 3  ;;  %s1266_s13 = scalar_lea.hbm %s1410_s0, %s688_s12 }
  0x3f   : > { %s223_s14 = scalar_lea.vmem [#allocation2], %s687_s8  ;;  %p1268_p11 = pnand %p894_p0, %p39_p5 }
  0x40   : > { %s230_s15 = sshll.u32 %s223_s14, 4  ;;  %s220_s17 = scalar_lea.sflag [#allocation3], %s219_s9  ;;  %s231_s15 = int_to_ptr.vmem [resolvable:$true] %s230_s15 }
  0x41   : > { %s1022_s23 = scalar_lea.hbm %s1266_s13, 128  ;;  %p1024_p1 = pneg %p1268_p11 }
  0x42   : > { %p1023_p7 = scmp.ne.s32.totalorder %s1266_s13, %s1022_s23  ;;  %s1027_s29 = scalar_lea.hbm %s1410_s0, 256 }
  0x43   : > { %p1028_p2 = scmp.lt.s32.totalorder %s1266_s13, %s1410_s0  ;;  %p1029_p4 = scmp.lt.s32.totalorder %s1027_s29, %s1022_s23 }
  0x44   : > { %p1025_p9 = pnand %p1024_p1, %p1023_p7 }
  0x45   : > { %p1030_p6 = por %p1029_p4, %p1028_p2 }
  0x46   : > { %p1026_p13 = pneg %p1025_p9 }
  0x48   : > { %p1031_p12 = pnand %p1030_p6, %p1026_p13 }
  0x4a   : > { %1034 = shalt.err (!%p1031_p12)
}
  0x4b   : > { %s1035_s10 = scalar_lea.vmem %s231_s15, 128  ;;  %s1129_s9 = smov [#allocation2]  }
  0x4c   : > { %p1036_p0 = scmp.ne.s32.totalorder %s231_s15, %s1035_s10  ;;  %s1040_s11 = sshll.u32 %s1129_s9, 4  ;;  %s1041_s11 = int_to_ptr.vmem [resolvable:$false] %s1040_s11 }
  0x4d   : > { %s1042_s14 = scalar_lea.vmem %s1041_s11, 256  ;;  %p1043_p7 = scmp.lt.s32.totalorder %s231_s15, %s1041_s11 }
  0x4e   : > { %p1038_p5 = pnand %p1036_p0, %p1024_p1  ;;  %p1044_p9 = scmp.lt.s32.totalorder %s1042_s14, %s1035_s10 }
  0x50   : > { %p1039_p3 = pneg %p1038_p5  ;;  %p1045_p10 = por %p1044_p9, %p1043_p7 }
  0x52   : > { %p1046_p8 = pnand %p1045_p10, %p1039_p3 }
  0x54   : > { %1049 = shalt.err (!%p1046_p8)
}
  0x55   : > { %886 = dma.hbm_to_vmem [thread:$0]  (!%p1268_p11), %s1266_s13, 128, %s231_s15, %s220_s17  }
  0x56   : > { %p1427_p13 = scmp.ne.s32.totalorder %s1422_s26, 0 }
  0x57   : > { %s1289_s23 = sand.u32 (!%p1427_p13), 1, %s1114_s19   ;;  %p1428_p10 = scmp.ne.s32.totalorder (!%p1427_p13), %s1420_s24, 0 }
  0x58   : > { %239 = sbr.rel (%p1427_p13) target bundleno = 701 (0x2bd), region = 40  ;;  %s690_s27 = sshll.u32 (!%p1427_p13), %s1289_s23, 3 }
  0x59   : > { %s242_s30 = scalar_lea.sflag (!%p1427_p13), [#allocation3], %s1289_s23  ;;  %s245_s29 = scalar_lea.vmem (!%p1427_p13), [#allocation2], %s690_s27 }
  0x5d   : > { %1093 = dma.done.wait (%p1428_p10), %s242_s30, 128  }
  0x5e   : > { %1095 = vsyncadd (%p1428_p10), %s242_s30, 4294967168  ;;  %p1429_p8 = scmp.eq.s32.totalorder %s1184_s22, 0 }
  0x60   : > { %1097 = dma.done.wait (%p1429_p8), [#allocation6], 4096   ;;  %p1430_p11 = pmov %p1429_p8 }
  0x61   : > { %p1431_p1 = pmov %p1429_p8 }
  0x62   : > { %1099 = vsyncadd (%p1430_p11), [#allocation6], 4294963200 }
  0x63   : > { %1101 = dma.done.wait (%p1431_p1), [#allocation9], 2048   ;;  %p1432_p2 = pmov %p1431_p1 }
  0x64   : > { %v1130_v0 = vmov 0.0   ;;  %v1309_v1 = vld [vmem:[%s245_s29] sm:$0xff]  ;;  %v313_v7 = vld [vmem:[#allocation5 + $0x68] sm:$0xff]  ;;  %v312_v9 = vld [vmem:[#allocation5 + $0x60] sm:$0xff]  ;;  %vm1131_vm0 = vmmov 0   ;;  %s698_s13 = sshll.u32 %s1184_s22, 7 }
  0x65   : > { %1103 = vsyncadd (%p1432_p2), [#allocation9], 4294965248  ;;  %752 = vmatprep.subr.mxu0 %v1130_v0  ;;  %787 = vmatprep.subr.mxu1 %v1130_v0  ;;  %v315_v2 = vld [vmem:[#allocation5 + $0x78] sm:$0xff]  ;;  %v285_v4 = vmul.f32 %v1309_v1, %v1309_v1  ;;  %v314_v5 = vld [vmem:[#allocation5 + $0x70] sm:$0xff]  ;;  %s283_s15 = scalar_lea.vmem [#allocation10], %s690_s27  ;;  %s1373_s8 = scalar_lea.hbm %s1415_s5, %s698_s13 }
  0x66   : > { %v401_v3 = vld [vmem:[#allocation7 + $0x78] sm:$0xff]  ;;  %753 = vmatpush3.msra.mxu0 %v315_v2  ;;  %v400_v6 = vld [vmem:[#allocation7 + $0x70] sm:$0xff]  ;;  %v399_v8 = vld [vmem:[#allocation7 + $0x68] sm:$0xff]  ;;  %784 = vmatprep.mubr.msk.f32.mxu0 %vm1131_vm0, %v1130_v0  ;;  %s582_s16 = sshll.u32 %s283_s15, 4  ;;  %s569_s10 = scalar_lea.sflag [#allocation4], %s1289_s23  ;;  %s583_s16 = int_to_ptr.vmem [resolvable:$true] %s582_s16 }
  0x67   : > { %788 = vmatpush3.msra.mxu1 %v401_v3  ;;  %754 = vmatprep.subr.mxu0 %v1130_v0  ;;  %v398_v10 = vld [vmem:[#allocation7 + $0x60] sm:$0xff]  ;;  %v311_v11 = vld [vmem:[#allocation5 + $0x58] sm:$0xff]  ;;  %v310_v13 = vld [vmem:[#allocation5 + $0x50] sm:$0xff]  ;;  %s1050_s9 = scalar_lea.vmem %s583_s16, 128  ;;  %p1433_p6 = scmp.ne.s32.totalorder %s1425_s7, 0 }
  0x68   : > { %789 = vmatprep.subr.mxu1 %v1130_v0  ;;  %286 = vadd.xlane.f32.xlu0 %v285_v4  ;;  %v397_v12 = vld [vmem:[#allocation7 + $0x58] sm:$0xff]  ;;  %v396_v14 = vld [vmem:[#allocation7 + $0x50] sm:$0xff]  ;;  %v309_v15 = vld [vmem:[#allocation5 + $0x48] sm:$0xff]  ;;  %p1051_p4 = scmp.ne.s32.totalorder %s583_s16, %s1050_s9  ;;  %s1132_s22 = smov [#allocation10]  }
  0x69   : > { %755 = vmatpush3.msra.mxu0 %v314_v5  ;;  %790 = vmatpush3.msra.mxu1 %v400_v6  ;;  %v395_v16 = vld [vmem:[#allocation7 + $0x48] sm:$0xff]  ;;  %v308_v17 = vld [vmem:[#allocation5 + $0x40] sm:$0xff]  ;;  %v307_v19 = vld [vmem:[#allocation5 + $0x38] sm:$0xff]  ;;  %s1054_s11 = sshll.u32 %s1132_s22, 4  ;;  %s1055_s11 = int_to_ptr.vmem [resolvable:$false] %s1054_s11 }
  0x6a   : > { %756 = vmatprep.subr.mxu0 %v1130_v0  ;;  %791 = vmatprep.subr.mxu1 %v1130_v0  ;;  %v394_v18 = vld [vmem:[#allocation7 + $0x40] sm:$0xff]  ;;  %v393_v20 = vld [vmem:[#allocation7 + $0x38] sm:$0xff]  ;;  %v306_v21 = vld [vmem:[#allocation5 + $0x30] sm:$0xff]  ;;  %p1052_p12 = pnand %p1051_p4, %p1433_p6  ;;  %s1056_s14 = scalar_lea.vmem %s1055_s11, 256 }
  0x6b   : > { %757 = vmatpush3.msra.mxu0 %v313_v7  ;;  %792 = vmatpush3.msra.mxu1 %v399_v8  ;;  %v392_v22 = vld [vmem:[#allocation7 + $0x30] sm:$0xff]  ;;  %v305_v23 = vld [vmem:[#allocation5 + $0x28] sm:$0xff]  ;;  %v304_v25 = vld [vmem:[#allocation5 + $0x20] sm:$0xff]  ;;  %p1057_p5 = scmp.lt.s32.totalorder %s583_s16, %s1055_s11  ;;  %p1058_p3 = scmp.lt.s32.totalorder %s1056_s14, %s1050_s9 }
  0x6c   : > { %758 = vmatprep.subr.mxu0 %v1130_v0  ;;  %793 = vmatprep.subr.mxu1 %v1130_v0  ;;  %v391_v24 = vld [vmem:[#allocation7 + $0x28] sm:$0xff]  ;;  %v390_v26 = vld [vmem:[#allocation7 + $0x20] sm:$0xff]  ;;  %v303_v27 = vld [vmem:[#allocation5 + $0x18] sm:$0xff]  ;;  %p1053_p0 = pneg %p1052_p12 }
  0x6d   : > { %759 = vmatpush3.msra.mxu0 %v312_v9  ;;  %794 = vmatpush3.msra.mxu1 %v398_v10  ;;  %v389_v28 = vld [vmem:[#allocation7 + $0x18] sm:$0xff]  ;;  %v302_v29 = vld [vmem:[#allocation5 + $0x10] sm:$0xff]  ;;  %v301_v31 = vld [vmem:[#allocation5 + $0x8] sm:$0xff]  ;;  %p1059_p7 = por %p1058_p3, %p1057_p5 }
  0x6e   : > { %760 = vmatprep.subr.mxu0 %v1130_v0  ;;  %795 = vmatprep.subr.mxu1 %v1130_v0  ;;  %v388_v30 = vld [vmem:[#allocation7 + $0x10] sm:$0xff]  ;;  %v387_v32 = vld [vmem:[#allocation7 + $0x8] sm:$0xff]  ;;  %v300_v33 = vld [vmem:[#allocation5] sm:$0xff] }
  0x6f   : > { %761 = vmatpush3.msra.mxu0 %v311_v11  ;;  %796 = vmatpush3.msra.mxu1 %v397_v12  ;;  %v386_v34 = vld [vmem:[#allocation7] sm:$0xff]  ;;  %v695_v39 = vld [vmem:[%s1411_s1] ss:$0 sm:$0xff]  ;;  %v495_v42 = vld [vmem:[#allocation8 + $0x78] sm:$0xff]  ;;  %p1060_p9 = pnand %p1059_p7, %p1053_p0 }
  0x70   : > { %762 = vmatprep.subr.mxu0 %v1130_v0  ;;  %797 = vmatprep.subr.mxu1 %v1130_v0  ;;  %v494_v43 = vld [vmem:[#allocation8 + $0x70] sm:$0xff]  ;;  %v493_v44 = vld [vmem:[#allocation8 + $0x68] sm:$0xff]  ;;  %v492_v45 = vld [vmem:[#allocation8 + $0x60] sm:$0xff] }
  0x71   : > { %763 = vmatpush3.msra.mxu0 %v310_v13  ;;  %798 = vmatpush3.msra.mxu1 %v396_v14  ;;  %v491_v46 = vld [vmem:[#allocation8 + $0x58] sm:$0xff]  ;;  %v490_v47 = vld [vmem:[#allocation8 + $0x50] sm:$0xff]  ;;  %v489_v48 = vld [vmem:[#allocation8 + $0x48] sm:$0xff] }
  0x72   : > { %764 = vmatprep.subr.mxu0 %v1130_v0  ;;  %799 = vmatprep.subr.mxu1 %v1130_v0  ;;  %v488_v49 = vld [vmem:[#allocation8 + $0x40] sm:$0xff]  ;;  %v487_v50 = vld [vmem:[#allocation8 + $0x38] sm:$0xff]  ;;  %v486_v51 = vld [vmem:[#allocation8 + $0x30] sm:$0xff] }
  0x73   : > { %765 = vmatpush3.msra.mxu0 %v309_v15  ;;  %800 = vmatpush3.msra.mxu1 %v395_v16  ;;  %v485_v52 = vld [vmem:[#allocation8 + $0x28] sm:$0xff]  ;;  %v484_v53 = vld [vmem:[#allocation8 + $0x20] sm:$0xff]  ;;  %v483_v54 = vld [vmem:[#allocation8 + $0x18] sm:$0xff] }
  0x74   : > { %766 = vmatprep.subr.mxu0 %v1130_v0  ;;  %801 = vmatprep.subr.mxu1 %v1130_v0  ;;  %v482_v55 = vld [vmem:[#allocation8 + $0x10] sm:$0xff]  ;;  %v481_v56 = vld [vmem:[#allocation8 + $0x8] sm:$0xff]  ;;  %v480_v57 = vld [vmem:[#allocation8] sm:$0xff] }
  0x75   : > { %767 = vmatpush3.msra.mxu0 %v308_v17  ;;  %802 = vmatpush3.msra.mxu1 %v394_v18 }
  0x76   : > { %768 = vmatprep.subr.mxu0 %v1130_v0  ;;  %803 = vmatprep.subr.mxu1 %v1130_v0 }
  0x77   : > { %769 = vmatpush3.msra.mxu0 %v307_v19  ;;  %804 = vmatpush3.msra.mxu1 %v393_v20 }
  0x78   : > { %770 = vmatprep.subr.mxu0 %v1130_v0  ;;  %805 = vmatprep.subr.mxu1 %v1130_v0 }
  0x79   : > { %771 = vmatpush3.msra.mxu0 %v306_v21  ;;  %806 = vmatpush3.msra.mxu1 %v392_v22 }
  0x7a   : > { %772 = vmatprep.subr.mxu0 %v1130_v0  ;;  %807 = vmatprep.subr.mxu1 %v1130_v0 }
  0x7b   : > { %773 = vmatpush3.msra.mxu0 %v305_v23  ;;  %808 = vmatpush3.msra.mxu1 %v391_v24 }
  0x7c   : > { %774 = vmatprep.subr.mxu0 %v1130_v0  ;;  %809 = vmatprep.subr.mxu1 %v1130_v0 }
  0x7d   : > { %775 = vmatpush3.msra.mxu0 %v304_v25  ;;  %810 = vmatpush3.msra.mxu1 %v390_v26 }
  0x7e   : > { %776 = vmatprep.subr.mxu0 %v1130_v0  ;;  %811 = vmatprep.subr.mxu1 %v1130_v0 }
  0x7f   : > { %777 = vmatpush3.msra.mxu0 %v303_v27  ;;  %812 = vmatpush3.msra.mxu1 %v389_v28 }
  0x80   : > { %778 = vmatprep.subr.mxu0 %v1130_v0  ;;  %813 = vmatprep.subr.mxu1 %v1130_v0 }
  0x81   : > { %779 = vmatpush3.msra.mxu0 %v302_v29  ;;  %814 = vmatpush3.msra.mxu1 %v388_v30 }
  0x82   : > { %780 = vmatprep.subr.mxu0 %v1130_v0  ;;  %815 = vmatprep.subr.mxu1 %v1130_v0 }
  0x83   : > { %781 = vmatpush3.msra.mxu0 %v301_v31  ;;  %816 = vmatpush3.msra.mxu1 %v387_v32 }
  0x84   : > { %782 = vmatprep.subr.mxu0 %v1130_v0  ;;  %817 = vmatprep.subr.mxu1 %v1130_v0 }
  0x85   : > { %783 = vmatpush3.msra.mxu0 %v300_v33  ;;  %818 = vmatpush3.msra.mxu1 %v386_v34 }
  0x86   : > { %819 = vmatprep.mubr.msk.f32.mxu1 %vm1131_vm0, %v1130_v0  ;;  %822 = vmatprep.subr.mxu0 %v1130_v0 }
  0xf1   : > { %v287_v35 = vpop.xlane.xlu0 %286 }
  0xf2   : > { %v288_v36 = vmul.f32 0.03125, %v287_v35 }
  0xf4   : > { %v289_v37 = vadd.f32 1e-06, %v288_v36 }
  0xf6   : > { %938 = vrsqrt.f32 %v289_v37 }
 0x103   : > { %v939_v38 = vpop.eup %938 }
 0x104   : > { %v291_v40 = vmul.f32 %v939_v38, %v1309_v1 }
 0x106   : > { %v299_v41 = vmul.f32 %v695_v39, %v291_v40 }
 0x108   : > { %785 = vmatmul.mubr.f32.vlgmr.msra.gmra.mxu0 %v299_v41  ;;  %820 = vmatmul.mubr.f32.vlgmr.msra.gmra.mxu1 %v299_v41 }
 0x109   : > { %854 = vmatprep.mubr.msk.f32.mxu0 %vm1131_vm0, %v1130_v0  ;;  %823 = vmatpush3.msra.mxu0 %v495_v42 }
 0x10a   : > { %824 = vmatprep.subr.mxu0 %v1130_v0 }
 0x10b   : > { %825 = vmatpush3.msra.mxu0 %v494_v43 }
 0x10c   : > { %826 = vmatprep.subr.mxu0 %v1130_v0 }
 0x10d   : > { %827 = vmatpush3.msra.mxu0 %v493_v44 }
 0x10e   : > { %828 = vmatprep.subr.mxu0 %v1130_v0 }
 0x10f   : > { %829 = vmatpush3.msra.mxu0 %v492_v45 }
 0x110   : > { %830 = vmatprep.subr.mxu0 %v1130_v0 }
 0x111   : > { %831 = vmatpush3.msra.mxu0 %v491_v46 }
 0x112   : > { %832 = vmatprep.subr.mxu0 %v1130_v0 }
 0x113   : > { %833 = vmatpush3.msra.mxu0 %v490_v47 }
 0x114   : > { %834 = vmatprep.subr.mxu0 %v1130_v0 }
 0x115   : > { %835 = vmatpush3.msra.mxu0 %v489_v48 }
 0x116   : > { %836 = vmatprep.subr.mxu0 %v1130_v0 }
 0x117   : > { %837 = vmatpush3.msra.mxu0 %v488_v49 }
 0x118   : > { %838 = vmatprep.subr.mxu0 %v1130_v0 }
 0x119   : > { %839 = vmatpush3.msra.mxu0 %v487_v50 }
 0x11a   : > { %840 = vmatprep.subr.mxu0 %v1130_v0 }
 0x11b   : > { %841 = vmatpush3.msra.mxu0 %v486_v51 }
 0x11c   : > { %842 = vmatprep.subr.mxu0 %v1130_v0 }
 0x11d   : > { %843 = vmatpush3.msra.mxu0 %v485_v52 }
 0x11e   : > { %844 = vmatprep.subr.mxu0 %v1130_v0 }
 0x11f   : > { %845 = vmatpush3.msra.mxu0 %v484_v53 }
 0x120   : > { %846 = vmatprep.subr.mxu0 %v1130_v0 }
 0x121   : > { %847 = vmatpush3.msra.mxu0 %v483_v54 }
 0x122   : > { %848 = vmatprep.subr.mxu0 %v1130_v0 }
 0x123   : > { %849 = vmatpush3.msra.mxu0 %v482_v55 }
 0x124   : > { %850 = vmatprep.subr.mxu0 %v1130_v0 }
 0x125   : > { %851 = vmatpush3.msra.mxu0 %v481_v56 }
 0x126   : > { %852 = vmatprep.subr.mxu0 %v1130_v0 }
 0x127   : > { %853 = vmatpush3.msra.mxu0 %v480_v57 }
 0x1c8   : > { %v382_v58 = vpop.f32.mrf.mxu0  ;;  %v468_v59 = vpop.f32.mrf.mxu1 }
 0x1c9   : > { %v696_v60 = vmul.f32 -1.442695, %v382_v58 }
 0x1ca   : > { %v786_v61 = vpop.f32.mrf.mxu0  ;;  %v821_v62 = vpop.f32.mrf.mxu1 }
 0x1cb   : > { %940 = vpow2.f32 %v696_v60 }
 0x1d8   : > { %v941_v63 = vpop.eup %940 }
 0x1d9   : > { %v475_v2 = vadd.f32 1.0, %v941_v63 }
 0x1db   : > { %942 = vrcp.f32 %v475_v2 }
 0x1e8   : > { %v943_v3 = vpop.eup %942 }
 0x1e9   : > { %v478_v4 = vmul.f32 %v943_v3, %v382_v58 }
 0x1eb   : > { %v479_v5 = vmul.f32 %v478_v4, %v468_v59 }
 0x1ed   : > { %855 = vmatmul.mubr.f32.vlgmr.msra.gmra.mxu0 %v479_v5 }
 0x2ad   : > { %v562_v0 = vpop.f32.mrf.mxu0 }
 0x2ae   : > { %v566_v6 = vadd.f32 %v562_v0, %v1309_v1 }
 0x2af   : > { %v856_v7 = vpop.f32.mrf.mxu0 }
 0x2b0   : > { %567 = vst [vmem:[%s283_s15] sm:$0xff] %v566_v6 }
 0x2b1   : > { %1063 = shalt.err (!%p1060_p9)
}
 0x2b2   : > { %s1064_s27 = scalar_lea.hbm %s1373_s8, 128  ;;  %s1068_s29 = scalar_lea.hbm %s1415_s5, 256 }
 0x2b3   : > { %p1065_p13 = scmp.ne.s32.totalorder %s1373_s8, %s1064_s27  ;;  %p1069_p11 = scmp.lt.s32.totalorder %s1373_s8, %s1415_s5 }
 0x2b4   : > { %p1070_p1 = scmp.lt.s32.totalorder %s1068_s29, %s1064_s27 }
 0x2b5   : > { %p1066_p10 = pnand %p1065_p13, %p1433_p6 }
 0x2b6   : > { %p1071_p2 = por %p1070_p1, %p1069_p11 }
 0x2b7   : > { %p1067_p8 = pneg %p1066_p10 }
 0x2b9   : > { %p1072_p4 = pnand %p1071_p2, %p1067_p8 }
 0x2bb   : > { %1075 = shalt.err (!%p1072_p4)
}
 0x2bc   : > { %871 = dma.vmem_to_hbm [thread:$0]  (%p1433_p6), %s583_s16, 128, %s1373_s8, %s569_s10  }
 0x2bd PF: > { %s594_s13 = sand.u32 1, %s1110_s18   ;;  %p1434_p12 = scmp.ne.s32.totalorder %s1421_s25, 0 }
 0x2be   : > { %p1435_p0 = scmp.ge.s32.totalorder %s1122_s21, 2  ;;  %s595_s15 = scalar_lea.sflag [#allocation4], %s594_s13 }
 0x2c0   : > { %p888_p5 = pnand %p1435_p0, %p1434_p12 }
 0x2c2   : > { %p889_p3 = pneg %p888_p5 }
 0x2c4   : > { %1105 = dma.done.wait (%p889_p3), %s595_s15, 128  }
 0x2c5   : > { %1107 = vsyncadd (%p889_p3), %s595_s15, 4294967168  ;;  %p20_p7 = scmp.ge.s32.totalorder %s1243_s28, 4   ;;  %s1436_s18 = smov %s1114_s19 }
 0x2c6   : > { %s1437_s19 = smov %s1118_s20  ;;  %s1438_s20 = smov %s1253_s6 }
 0x2c7   : > { %s1439_s21 = smov %s1243_s28  ;;  %22 = sbr.rel (!%p20_p7) target bundleno = 7 (0x7), region = 97 }
 0x2cc   :  { %600 = vsyncpa [#allocation3], 1 }
 0x2cd   :  { %602 = vsyncpa [#allocation3 + $0x1], 1 }
 0x2ce   :  { %603 = vsyncpa [#allocation6], 1 }
 0x2cf   :  { %604 = vsyncpa [#allocation9], 1 }
 0x2d0   :  { %605 = vsyncpa [#allocation4], 1 }
 0x2d1   :  { %607 = vsyncpa [#allocation4 + $0x1], 1 }

</bundles_post_ra>
